<compile_context>
chip_gen: v7x
topology: tpu7x:2x2x1
jax: 0.10.0
libtpu: 0.0.40
codegen_flags: <defaults>
</compile_context>

<pallas_src>
import functools

import jax
import jax.numpy as jnp
from jax import lax
from jax.experimental import pallas as pl
from jax.experimental.pallas import tpu as pltpu


def _mlp_conv_kernel(x_ref, w1_ref, b1_ref, w2_ref, b2_ref, w3_ref, b3_ref,
                     o_ref, *, chunk, n_chunks):
    # x_ref: (1, C_in, TN) tile of the NCW input; N stays on the lane axis.
    # Load the tiny, grid-invariant weights/biases once per grid step.
    w1 = w1_ref[...]
    b1 = b1_ref[...]
    w2 = w2_ref[...]
    b2 = b2_ref[...]
    w3 = w3_ref[...]
    b3 = b3_ref[...]

    def column_block(c):
        col = pl.multiple_of(c * chunk, chunk)
        # Cast AFTER the load: HBM/VMEM input traffic stays at the caller's
        # dtype; the (optional) bf16 cast is an on-chip VPU op.
        x = x_ref[0, :, pl.ds(col, chunk)].astype(w1.dtype)      # (C_in, chunk)
        h = jnp.dot(w1, x, preferred_element_type=jnp.float32)   # (C1, chunk)
        h = jnp.maximum(h + b1, 0.0).astype(w2.dtype)            # ReLU
        h = jnp.dot(w2, h, preferred_element_type=jnp.float32)   # (C2, chunk)
        h = jnp.maximum(h + b2, 0.0).astype(w3.dtype)            # ReLU
        o = jnp.dot(w3, h, preferred_element_type=jnp.float32) + b3
        o_ref[0, :, pl.ds(col, chunk)] = o.astype(o_ref.dtype)   # final: no act

    if n_chunks == 1:
        column_block(0)
    else:
        # Sub-tile the lane axis so the (C1, chunk)/(C2, chunk) intermediates
        # live in vregs instead of spilling to VMEM (keeps vst/vld slots off
        # the critical path on v5e/v7x).
        def body(c, carry):
            column_block(c)
            return carry

        lax.fori_loop(0, n_chunks, body, 0,
                      unroll=True if n_chunks <= 16 else 8)


def _pick_tile_n(n_padded, bytes_per_lane, vmem_budget_bytes):
    """Largest lane-tile that divides the (128-padded) N and fits the budget."""
    for cand in (32768, 16384, 8192, 4096, 2048, 1024, 512, 256, 128):
        if n_padded % cand == 0 and cand * bytes_per_lane <= vmem_budget_bytes:
            return cand
    return 128


def _pick_chunk(tile_n):
    for cand in (512, 256, 128):
        if tile_n % cand == 0:
            return cand
    return tile_n


def mlp_conv_forward(x_ncw, params, *, tile_n=None, compute_dtype=None,
                     out_dtype=None, input_buffers=2,
                     vmem_budget_bytes=12 << 20):
    """x_ncw: (B, C_in, N) in PyTorch NCW layout. Returns (B, C_out, N).

    compute_dtype=jnp.bfloat16 runs the MXU in bf16 (f32 accumulation kept;
    inter-layer activations are quantized to bf16 — document downstream).
    Valid on v5e as well as v6e/v7x. out_dtype lets downstream take bf16
    output (output bytes dominate HBM traffic ~4:1 for C3=16 vs C_in=4).
    """
    (w1, b1), (w2, b2), (w3, b3) = params
    B, C_in, N = x_ncw.shape
    C1, C2, C3 = w1.shape[0], w2.shape[0], w3.shape[0]

    if compute_dtype is None:
        compute_dtype = x_ncw.dtype
    if out_dtype is None:
        out_dtype = x_ncw.dtype

    # Weights are tiny: cast in the wrapper. The input is NOT cast here (that
    # would be a separate full-array XLA pass); it is cast per-tile in-kernel.
    w1, w2, w3 = (w.astype(compute_dtype) for w in (w1, w2, w3))
    b1, b2, b3 = (b.astype(jnp.float32) for b in (b1, b2, b3))

    # Pad N to a multiple of 128 so every output store is lane-dense.
    n_pad = (-N) % 128
    if n_pad:
        x_ncw = jnp.pad(x_ncw, ((0, 0), (0, 0), (0, n_pad)))
    N_p = N + n_pad

    in_itemsize = x_ncw.dtype.itemsize
    out_itemsize = jnp.dtype(out_dtype).itemsize
    # Double-buffered x and out tiles dominate per-step VMEM.
    bytes_per_lane = 2 * (C_in * in_itemsize + C3 * out_itemsize)
    if tile_n is None:
        tile_n = _pick_tile_n(N_p, bytes_per_lane, vmem_budget_bytes)
    assert N_p % tile_n == 0 and tile_n % 128 == 0
    n_tiles = N_p // tile_n

    chunk = _pick_chunk(tile_n)
    n_chunks = tile_n // chunk
    kernel = functools.partial(_mlp_conv_kernel, chunk=chunk, n_chunks=n_chunks)

    flops = 2 * B * N_p * (C_in * C1 + C1 * C2 + C2 * C3)
    bytes_accessed = (x_ncw.size * in_itemsize
                      + B * C3 * N_p * out_itemsize
                      + sum(a.size * a.dtype.itemsize
                            for a in (w1, b1, w2, b2, w3, b3)))
    cost = pl.CostEstimate(flops=flops, transcendentals=0,
                           bytes_accessed=bytes_accessed)

    # Optional deeper input buffering (e.g. 3 on v7x); default 2 = standard.
    x_kwargs = {}
    if input_buffers != 2:
        x_kwargs["pipeline_mode"] = pl.Buffered(input_buffers)

    tile_vmem = bytes_per_lane * tile_n
    vmem_limit = int(min(48 << 20, max(32 << 20, 2 * tile_vmem)))

    out_p = pl.pallas_call(
        kernel,
        out_shape=jax.ShapeDtypeStruct((B, C3, N_p), out_dtype),
        grid_spec=pltpu.PrefetchScalarGridSpec(
            num_scalar_prefetch=0,
            grid=(B, n_tiles),
            in_specs=[
                pl.BlockSpec((1, C_in, tile_n), lambda b, n: (b, 0, n),
                             **x_kwargs),
                pl.BlockSpec((C1, C_in), lambda b, n: (0, 0)),
                pl.BlockSpec((C1, 1), lambda b, n: (0, 0)),
                pl.BlockSpec((C2, C1), lambda b, n: (0, 0)),
                pl.BlockSpec((C2, 1), lambda b, n: (0, 0)),
                pl.BlockSpec((C3, C2), lambda b, n: (0, 0)),
                pl.BlockSpec((C3, 1), lambda b, n: (0, 0)),
            ],
            out_specs=pl.BlockSpec((1, C3, tile_n), lambda b, n: (b, 0, n)),
        ),
        compiler_params=pltpu.CompilerParams(
            dimension_semantics=("parallel", "parallel"),
            vmem_limit_bytes=vmem_limit),
        cost_estimate=cost,
    )(x_ncw, w1, b1, w2, b2, w3, b3)

    return out_p if n_pad == 0 else out_p[:, :, :N]


def init_params(key, in_channel, layer_dims):
    """Deterministic synthetic params, PyTorch Conv1d(k=1) layout:
    weight (C_out, C_in), bias (C_out, 1), uniform(-1/sqrt(fan_in), +)."""
    params = []
    last = in_channel
    for out_c in layer_dims:
        key, kw, kb = jax.random.split(key, 3)
        scale = 1.0 / jnp.sqrt(jnp.float32(last))
        w = jax.random.uniform(kw, (out_c, last), jnp.float32, -scale, scale)
        b = jax.random.uniform(kb, (out_c, 1), jnp.float32, -scale, scale)
        params.append((w, b))
        last = out_c
    return params


def mlp_conv_reference(x_ncw, params):
    """Plain-JAX reference matching the PyTorch forward (NCW throughout)."""
    h = x_ncw
    n_layers = len(params)
    for i, (w, b) in enumerate(params):
        h = jnp.einsum("oc,bcn->bon", w, h) + b[None, :, :]
        if i < n_layers - 1:
            h = jnp.maximum(h, 0.0)
    return h


if __name__ == "__main__":
    key = jax.random.PRNGKey(0)
    k_x, k_p = jax.random.split(key)

    B, C_in, N = 2, 4, 256
    layer_dims = [32, 64, 16]   # MLP_CONV(in_channel=4, layer_dims=[32, 64, 16])

    x = jax.random.normal(k_x, (B, C_in, N), jnp.float32)
    params = init_params(k_p, C_in, layer_dims)

    # f32 path: exact vs reference.
    y = jax.block_until_ready(mlp_conv_forward(x, params))
    y_ref = mlp_conv_reference(x, params)
    assert y.shape == (B, layer_dims[-1], N)
    assert jnp.allclose(y, y_ref, atol=1e-5, rtol=1e-5)

    # bf16 MXU path (valid on v5e/v6e/v7x); inter-layer activations quantized,
    # so tolerance is loosened.
    y_bf16 = jax.block_until_ready(
        mlp_conv_forward(x, params, compute_dtype=jnp.bfloat16))
    assert jnp.allclose(y_bf16, y_ref, atol=5e-2, rtol=5e-2)

    # Non-128-multiple N: wrapper pads to 128 so stores stay lane-dense.
    N2 = 200
    x2 = jax.random.normal(k_x, (B, C_in, N2), jnp.float32)
    y2 = jax.block_until_ready(mlp_conv_forward(x2, params))
    y2_ref = mlp_conv_reference(x2, params)
    assert y2.shape == (B, layer_dims[-1], N2)
    assert jnp.allclose(y2, y2_ref, atol=1e-5, rtol=1e-5)

    print("KERNEL_OK")
</pallas_src>

<mosaic_0001>
module attributes {stable_mosaic.version = 11 : i64} {
  func.func @_mlp_conv_kernel(%arg0: i32, %arg1: i32, %arg2: memref<1x4x256xf32, #tpu.memory_space<vmem>>, %arg3: memref<32x4xf32, #tpu.memory_space<vmem>>, %arg4: memref<32x1xf32, #tpu.memory_space<vmem>>, %arg5: memref<64x32xf32, #tpu.memory_space<vmem>>, %arg6: memref<64x1xf32, #tpu.memory_space<vmem>>, %arg7: memref<16x64xf32, #tpu.memory_space<vmem>>, %arg8: memref<16x1xf32, #tpu.memory_space<vmem>>, %arg9: memref<1x16x256xf32, #tpu.memory_space<vmem>>) attributes {dimension_semantics = [#tpu.dimension_semantics<parallel>, #tpu.dimension_semantics<parallel>], iteration_bounds = array<i64: 2, 1>, scalar_prefetch = 0 : i64, scratch_operands = 0 : i64, tpu.core_type = #tpu.core_type<tc>, window_params = [{transform_indices = @transform_0, window_bounds = array<i64: 1, 4, 256>}, {pipeline_mode = #tpu.pipeline_mode<synchronous>, transform_indices = @transform_1, window_bounds = array<i64: 32, 4>}, {pipeline_mode = #tpu.pipeline_mode<synchronous>, transform_indices = @transform_2, window_bounds = array<i64: 32, 1>}, {pipeline_mode = #tpu.pipeline_mode<synchronous>, transform_indices = @transform_3, window_bounds = array<i64: 64, 32>}, {pipeline_mode = #tpu.pipeline_mode<synchronous>, transform_indices = @transform_4, window_bounds = array<i64: 64, 1>}, {pipeline_mode = #tpu.pipeline_mode<synchronous>, transform_indices = @transform_5, window_bounds = array<i64: 16, 64>}, {pipeline_mode = #tpu.pipeline_mode<synchronous>, transform_indices = @transform_6, window_bounds = array<i64: 16, 1>}, {transform_indices = @transform_7, window_bounds = array<i64: 1, 16, 256>}]} {
    %c0 = arith.constant 0 : index
    %c0_0 = arith.constant 0 : index
    %0 = vector.load %arg3[%c0, %c0_0] : memref<32x4xf32, #tpu.memory_space<vmem>>, vector<32x4xf32>
    %c0_1 = arith.constant 0 : index
    %c0_2 = arith.constant 0 : index
    %1 = vector.load %arg4[%c0_1, %c0_2] : memref<32x1xf32, #tpu.memory_space<vmem>>, vector<32x1xf32>
    %c0_3 = arith.constant 0 : index
    %c0_4 = arith.constant 0 : index
    %2 = vector.load %arg5[%c0_3, %c0_4] : memref<64x32xf32, #tpu.memory_space<vmem>>, vector<64x32xf32>
    %c0_5 = arith.constant 0 : index
    %c0_6 = arith.constant 0 : index
    %3 = vector.load %arg6[%c0_5, %c0_6] : memref<64x1xf32, #tpu.memory_space<vmem>>, vector<64x1xf32>
    %c0_7 = arith.constant 0 : index
    %c0_8 = arith.constant 0 : index
    %4 = vector.load %arg7[%c0_7, %c0_8] : memref<16x64xf32, #tpu.memory_space<vmem>>, vector<16x64xf32>
    %c0_9 = arith.constant 0 : index
    %c0_10 = arith.constant 0 : index
    %5 = vector.load %arg8[%c0_9, %c0_10] : memref<16x1xf32, #tpu.memory_space<vmem>>, vector<16x1xf32>
    %c0_i32 = arith.constant 0 : i32
    %6 = tpu.assume_multiple %c0_i32, 256 : i32
    %c0_11 = arith.constant 0 : index
    %c0_12 = arith.constant 0 : index
    %7 = arith.index_cast %6 : i32 to index
    %8 = vector.load %arg2[%c0_11, %c0_12, %7] : memref<1x4x256xf32, #tpu.memory_space<vmem>>, vector<1x4x256xf32>
    %9 = vector.shape_cast %8 : vector<1x4x256xf32> to vector<4x256xf32>
    %cst = arith.constant dense<0.000000e+00> : vector<32x256xf32>
    %10 = tpu.matmul %0, %9, %cst {dimension_numbers = #tpu.dot_dimension_numbers<[1], [0], [0], [1], [0, 0, 1, 1], [], []>} : vector<32x4xf32>, vector<4x256xf32>, vector<32x256xf32> -> vector<32x256xf32>
    %11 = vector.broadcast %1 : vector<32x1xf32> to vector<32x256xf32>
    %12 = arith.addf %10, %11 : vector<32x256xf32>
    %cst_13 = arith.constant 0.000000e+00 : f32
    %13 = vector.broadcast %cst_13 : f32 to vector<32x256xf32>
    %14 = arith.maximumf %12, %13 : vector<32x256xf32>
    %cst_14 = arith.constant dense<0.000000e+00> : vector<64x256xf32>
    %15 = tpu.matmul %2, %14, %cst_14 {dimension_numbers = #tpu.dot_dimension_numbers<[1], [0], [0], [1], [0, 0, 1, 1], [], []>} : vector<64x32xf32>, vector<32x256xf32>, vector<64x256xf32> -> vector<64x256xf32>
    %16 = vector.broadcast %3 : vector<64x1xf32> to vector<64x256xf32>
    %17 = arith.addf %15, %16 : vector<64x256xf32>
    %cst_15 = arith.constant 0.000000e+00 : f32
    %18 = vector.broadcast %cst_15 : f32 to vector<64x256xf32>
    %19 = arith.maximumf %17, %18 : vector<64x256xf32>
    %cst_16 = arith.constant dense<0.000000e+00> : vector<16x256xf32>
    %20 = tpu.matmul %4, %19, %cst_16 {dimension_numbers = #tpu.dot_dimension_numbers<[1], [0], [0], [1], [0, 0, 1, 1], [], []>} : vector<16x64xf32>, vector<64x256xf32>, vector<16x256xf32> -> vector<16x256xf32>
    %21 = vector.broadcast %5 : vector<16x1xf32> to vector<16x256xf32>
    %22 = arith.addf %20, %21 : vector<16x256xf32>
    %c0_17 = arith.constant 0 : index
    %c0_18 = arith.constant 0 : index
    %23 = arith.index_cast %6 : i32 to index
    %24 = vector.load %arg9[%c0_17, %c0_18, %23] : memref<1x16x256xf32, #tpu.memory_space<vmem>>, vector<1x16x256xf32>
    %25 = vector.shape_cast %24 : vector<1x16x256xf32> to vector<16x256xf32>
    %26 = vector.shape_cast %22 : vector<16x256xf32> to vector<1x16x256xf32>
    tpu.vector_store %arg9[%c0_17, %c0_18, %23], %26 {strides = array<i32>} : memref<1x16x256xf32, #tpu.memory_space<vmem>>, vector<1x16x256xf32>,
    return
  }
  func.func @transform_0(%arg0: i32, %arg1: i32) -> (i32, i32, i32) {
    %c0_i32 = arith.constant 0 : i32
    %c0_i32_0 = arith.constant 0 : i32
    return %arg0, %c0_i32, %arg1 : i32, i32, i32
  }
  func.func @transform_1(%arg0: i32, %arg1: i32) -> (i32, i32) {
    %c0_i32 = arith.constant 0 : i32
    %c0_i32_0 = arith.constant 0 : i32
    %c0_i32_1 = arith.constant 0 : i32
    return %c0_i32, %c0_i32_0 : i32, i32
  }
  func.func @transform_2(%arg0: i32, %arg1: i32) -> (i32, i32) {
    %c0_i32 = arith.constant 0 : i32
    %c0_i32_0 = arith.constant 0 : i32
    %c0_i32_1 = arith.constant 0 : i32
    return %c0_i32, %c0_i32_0 : i32, i32
  }
  func.func @transform_3(%arg0: i32, %arg1: i32) -> (i32, i32) {
    %c0_i32 = arith.constant 0 : i32
    %c0_i32_0 = arith.constant 0 : i32
    %c0_i32_1 = arith.constant 0 : i32
    return %c0_i32, %c0_i32_0 : i32, i32
  }
  func.func @transform_4(%arg0: i32, %arg1: i32) -> (i32, i32) {
    %c0_i32 = arith.constant 0 : i32
    %c0_i32_0 = arith.constant 0 : i32
    %c0_i32_1 = arith.constant 0 : i32
    return %c0_i32, %c0_i32_0 : i32, i32
  }
  func.func @transform_5(%arg0: i32, %arg1: i32) -> (i32, i32) {
    %c0_i32 = arith.constant 0 : i32
    %c0_i32_0 = arith.constant 0 : i32
    %c0_i32_1 = arith.constant 0 : i32
    return %c0_i32, %c0_i32_0 : i32, i32
  }
  func.func @transform_6(%arg0: i32, %arg1: i32) -> (i32, i32) {
    %c0_i32 = arith.constant 0 : i32
    %c0_i32_0 = arith.constant 0 : i32
    %c0_i32_1 = arith.constant 0 : i32
    return %c0_i32, %c0_i32_0 : i32, i32
  }
  func.func @transform_7(%arg0: i32, %arg1: i32) -> (i32, i32, i32) {
    %c0_i32 = arith.constant 0 : i32
    %c0_i32_0 = arith.constant 0 : i32
    return %arg0, %c0_i32, %arg1 : i32, i32, i32
  }
}

</mosaic_0001>

<bundles_post_ra>
// kernel: tpu_custom_call.1
= control target key start
LH: loop header
LB: loop body
LE: loop exit
PB: predicated region body
PF: predicated region fallthrough
CT: control target
= control target key end

     0   :  { %12 = vsyncpa [#allocation3], 0  ;;  %s1328_s0 = inlined_call_operand.vmem [shape: f32[2,4,256], index: 0, kind: input, shape index: {}]   ;;  %s1329_s1 = inlined_call_operand.vmem [shape: f32[32,4], index: 1, kind: input, shape index: {}]   ;;  %s1330_s2 = inlined_call_operand.vmem [shape: f32[32,1], index: 2, kind: input, shape index: {}]   ;;  %s1331_s3 = inlined_call_operand.vmem [shape: f32[64,32], index: 3, kind: input, shape index: {}]   ;;  %s1332_s4 = inlined_call_operand.vmem [shape: f32[64,1], index: 4, kind: input, shape index: {}]   ;;  %s1333_s5 = inlined_call_operand.vmem [shape: f32[16,64], index: 5, kind: input, shape index: {}]   ;;  %s1334_s6 = inlined_call_operand.vmem [shape: f32[16,1], index: 6, kind: input, shape index: {}]   ;;  %s1335_s7 = inlined_call_operand.hbm [shape: f32[2,16,256], index: 7, kind: output, shape index: {}]  }
   0x1   :  { %14 = vsyncpa [#allocation3 + $0x1], 0  ;;  %s1103_s24 = smov 0   ;;  %s1105_s25 = smov 0  }
   0x2   :  { %s1107_s26 = smov 0   ;;  %s1109_s27 = smov 0  }
   0x3   :  { %s1111_s28 = smov 0   ;;  %s1113_s29 = smov 0  }
   0x4 LB: > { %s861_s30 = sadd.s32 4294967295, %s1056_s29   ;;  %s862_s8 = sadd.s32 4294967294, %s1056_s29   ;;  %s1056_s29 = sphi %s1113_s29, %s20_s29   ;;  %s1052_s28 = sphi %s1111_s28, %s1342_s28   ;;  %s1048_s27 = sphi %s1109_s27, %s1341_s27   ;;  %s1044_s26 = sphi %s1107_s26, %s1340_s26   ;;  %s1040_s25 = sphi %s1105_s25, %s1339_s25   ;;  %s1036_s24 = sphi %s1103_s24, %s1338_s24  }
   0x5   : > { %s32_s9 = sadd.s32 1, %s1052_s28  ;;  %s195_s10 = sadd.s32 1, %s1044_s26 }
   0x6   : > { %p34_p0 = scmp.ge.s32.totalorder %s32_s9, 2  ;;  %p205_p1 = scmp.ne.s32.totalorder %s1044_s26, %s1040_s25 }
   0x7   : > { %p206_p2 = scmp.eq.s32.totalorder %s861_s30, 1  ;;  %p211_p3 = scmp.ne.s32.totalorder %s1040_s25, %s1036_s24 }
   0x8   : > { %s1344_s9 = smov (%p34_p0, %s32_s9), 0  ;;  %p212_p5 = scmp.eq.s32.totalorder %s862_s8, 1 }
   0x9   : > { %p1143_p4 = por %p206_p2, %p205_p1  ;;  %s190_s12 = ssub.s32 %s1052_s28, %s1344_s9 }
   0xa   : > { %p865_p6 = scmp.ge.s32.totalorder %s1056_s29, 1  ;;  %p193_p7 = scmp.eq.s32.totalorder %s190_s12, 0 }
   0xb   : > { %p1150_p8 = por %p212_p5, %p211_p3  ;;  %p261_p9 = scmp.lt.s32.totalorder %s1056_s29, 3 }
   0xc   : > { %s1156_s14 = scalar_select %p193_p7, %s1044_s26, %s195_s10  }
   0xd   : > { %p262_p10 = pnand %p865_p6, %p261_p9 }
   0xe   : > { %p298_p11 = scmp.lt.s32.totalorder (!%p262_p10), %s1048_s27, 1  ;;  %v1058_v0 = vmov (!%p262_p10), 0.0   ;;  %v312_v1 = vld [vmem:[%s1330_s2] sm:$0xff] (!%p262_p10)  ;;  %v1059_v2 = vmov (!%p262_p10), 0   ;;  %v314_v3 = vld [vmem:[%s1330_s2 + $0x10] sm:$0xff] (!%p262_p10)  ;;  %v313_v4 = vld [vmem:[%s1330_s2 + $0x8] sm:$0xff] (!%p262_p10) }
   0xf   : > { %265 = sbr.rel (%p262_p10) target bundleno = 751 (0x2ef), region = 48  ;;  %441 = vmatprep.mubr.f32.mxu0 (!%p262_p10), %v1058_v0  ;;  %603 = vmatprep.mubr.f32.mxu1 (!%p262_p10), %v1058_v0  ;;  %v315_v5 = vld [vmem:[%s1330_s2 + $0x18] sm:$0xff] (!%p262_p10)  ;;  %vm372_vm0 = vcmask (!%p262_p10), 1043456   ;;  %v308_v8 = vld [vmem:[%s1329_s1] sm:$0xff] (!%p262_p10)  ;;  %vm359_vm1 = vcmask (!%p262_p10), 31744   ;;  %v325_v10 = vld [vmem:[%s1332_s4 + $0x8] sm:$0xff] (!%p262_p10) }
  0x10   : > { %975 = vset.pattern.permute.xlu0 (!%p262_p10), %v1059_v2  ;;  %976 = vset.pattern.permute.xlu1 (!%p262_p10), %v1059_v2  ;;  %v324_v9 = vld [vmem:[%s1332_s4] sm:$0xff] (!%p262_p10)  ;;  %v309_v11 = vld [vmem:[%s1329_s1 + $0x8] sm:$0xff] (!%p262_p10)  ;;  %v326_v12 = vld [vmem:[%s1332_s4 + $0x10] sm:$0xff] (!%p262_p10)  ;;  %vm514_vm2 = vcmask (!%p262_p10), 261120   ;;  %vm678_vm3 = vcmask (!%p262_p10), 523264   ;;  %s294_s30 = sand.u32 (!%p262_p10), 1, %s1040_s25  }
  0x11   : > { %339 = vperm.xlu0 (!%p262_p10), %975, %v312_v1   ;;  %349 = vperm.xlu1 (!%p262_p10), %976, %v314_v3   ;;  %v327_v13 = vld [vmem:[%s1332_s4 + $0x18] sm:$0xff] (!%p262_p10)  ;;  %v310_v14 = vld [vmem:[%s1329_s1 + $0x10] sm:$0xff] (!%p262_p10)  ;;  %v328_v15 = vld [vmem:[%s1332_s4 + $0x20] sm:$0xff] (!%p262_p10)  ;;  %s866_s8 = sshll.u32 (!%p262_p10), %s294_s30, 5  ;;  %s891_s15 = sshll.u32 (!%p262_p10), %s1048_s27, 9 }
  0x12   : > { %v329_v16 = vld [vmem:[%s1332_s4 + $0x28] sm:$0xff] (!%p262_p10)  ;;  %v311_v17 = vld [vmem:[%s1329_s1 + $0x18] sm:$0xff] (!%p262_p10)  ;;  %v330_v18 = vld [vmem:[%s1332_s4 + $0x30] sm:$0xff] (!%p262_p10)  ;;  %s296_s10 = scalar_lea.vmem (!%p262_p10), [#allocation2], %s866_s8  ;;  %s1280_s18 = scalar_lea.hbm (!%p262_p10), %s1335_s7, %s891_s15 }
  0x13   : > { %v331_v19 = vld [vmem:[%s1332_s4 + $0x38] sm:$0xff] (!%p262_p10)  ;;  %v334_v20 = vld [vmem:[%s1334_s6] sm:$0xff] (!%p262_p10)  ;;  %v335_v21 = vld [vmem:[%s1334_s6 + $0x8] sm:$0xff] (!%p262_p10)  ;;  %s1060_s21 = smov (!%p262_p10), [#allocation2]  }
  0x14   : > { %v316_v54 = vld [vmem:[%s1331_s3] sm:$0xff] (!%p262_p10)  ;;  %v317_v55 = vld [vmem:[%s1331_s3 + $0x8] sm:$0xff] (!%p262_p10)  ;;  %v318_v56 = vld [vmem:[%s1331_s3 + $0x10] sm:$0xff] (!%p262_p10) }
  0x15   : > { %344 = vperm.xlu0 (!%p262_p10), %975, %v313_v4   ;;  %354 = vperm.xlu1 (!%p262_p10), %976, %v315_v5   ;;  %v319_v57 = vld [vmem:[%s1331_s3 + $0x18] sm:$0xff] (!%p262_p10)  ;;  %v320_v58 = vld [vmem:[%s1331_s3 + $0x20] sm:$0xff] (!%p262_p10)  ;;  %v321_v59 = vld [vmem:[%s1331_s3 + $0x28] sm:$0xff] (!%p262_p10) }
  0x16   : > { %s299_s17 = scalar_select %p298_p11, %s1048_s27, 1  ;;  %v322_v60 = vld [vmem:[%s1331_s3 + $0x30] sm:$0xff]  ;;  %v323_v61 = vld [vmem:[%s1331_s3 + $0x38] sm:$0xff] }
  0x17   : > { %s1282_s27 = scalar_lea.sflag [#allocation3], %s294_s30 }
  0x18   : > { %s890_s20 = sshll.u32 %s299_s17, 3 }
  0x19   : > { %s305_s12 = scalar_lea.vmem %s1328_s0, %s890_s20  ;;  %476 = vperm.xlu0 %975, %v324_v9   ;;  %481 = vperm.xlu1 %976, %v325_v10   ;;  %s982_s20 = sshll.u32 %s1060_s21, 4  ;;  %s983_s20 = int_to_ptr.vmem [resolvable:$false] %s982_s20 }
  0x1a   : > { %v336_v6 = vld [vmem:[%s305_s12] sm:$0xff]  ;;  %s782_s12 = sshll.u32 %s296_s10, 4  ;;  %s984_s22 = scalar_lea.vmem %s983_s20, 1024  ;;  %s1275_s12 = int_to_ptr.vmem [resolvable:$true] %s782_s12 }
  0x1b   : > { %v358_v7 = vcombine.high %v336_v6, %v336_v6  ;;  %s978_s19 = scalar_lea.vmem %s1275_s12, 512  ;;  %p985_p1 = scmp.lt.s32.totalorder %s1275_s12, %s983_s20 }
  0x1c   : > { %p979_p12 = scmp.ne.s32.totalorder %s1275_s12, %s978_s19  ;;  %p986_p2 = scmp.lt.s32.totalorder %s984_s22, %s978_s19 }
  0x1d   : > { %869 = vmatprep.subr.msk.mxu0 %vm372_vm0, %v358_v7  ;;  %486 = vperm.xlu0 %975, %v326_v12  }
  0x1e   : > { %870 = vmatpush1.msk.msra.mxu0 %vm372_vm0, %v336_v6  ;;  %491 = vperm.xlu1 %976, %v327_v13   ;;  %p980_p13 = pnand %p979_p12, %p1143_p4  ;;  %p987_p3 = por %p986_p2, %p985_p1 }
  0x1f   : > { %871 = vmatmul.mubr.msk.f32.vlgmr.msra.gmra.mrb[0].mxu0 %vm359_vm1, %v308_v8 }
  0x20   : > { %447 = vmatprep.mubr.f32.mxu0 %v1058_v0  ;;  %p981_p0 = pneg %p980_p13 }
  0x21   : > { %496 = vperm.xlu0 %975, %v328_v15  }
  0x22   : > { %501 = vperm.xlu1 %976, %v329_v16   ;;  %p988_p5 = pnand %p987_p3, %p981_p0 }
  0x23   : > { %872 = vmatmul.mubr.msk.f32.gmra.mrb[2].mxu0 %vm359_vm1, %v309_v11 }
  0x24   : > { %453 = vmatprep.mubr.f32.mxu0 %v1058_v0 }
  0x25   : > { %506 = vperm.xlu0 %975, %v330_v18  }
  0x26   : > { %511 = vperm.xlu1 %976, %v331_v19  }
  0x27   : > { %873 = vmatmul.mubr.msk.f32.gmra.mrb[4].mxu0 %vm359_vm1, %v310_v14 }
  0x28   : > { %459 = vmatprep.mubr.f32.mxu0 %v1058_v0 }
  0x29   : > { %670 = vperm.xlu0 %975, %v334_v20  }
  0x2a   : > { %675 = vperm.xlu1 %976, %v335_v21  }
  0x2b   : > { %874 = vmatmul.mubr.msk.f32.gmra.mrb[6].mxu0 %vm359_vm1, %v311_v17 }
  0x2c   : > { %749 = vmatprep.mubr.f32.mxu0 %v1058_v0 }
  0x90   : > { %v340_v22 = vpop.permute.xlu0 %339  ;;  %v350_v31 = vpop.permute.xlu1 %349 }
  0x94   : > { %v345_v26 = vpop.permute.xlu0 %344  ;;  %v355_v42 = vpop.permute.xlu1 %354 }
  0x98   : > { %v477_v1 = vpop.permute.xlu0 %476  ;;  %v482_v3 = vpop.permute.xlu1 %481 }
  0x9c   : > { %v487_v16 = vpop.permute.xlu0 %486 }
  0x9d   : > { %v492_v19 = vpop.permute.xlu1 %491 }
  0xf2   : > { %v443_v23 = vpop.f32.mrb[0].mxu0 }
  0xf3   : > { %v445_v24 = vpop.f32.mrb[1].mxu0  ;;  %v444_v25 = vadd.f32 %v443_v23, %v340_v22 }
  0xf4   : > { %v446_v27 = vadd.f32 %v445_v24, %v340_v22 }
  0xf5   : > { %v466_v33 = vmax.f32 %v444_v25, 0.0 }
  0xf6   : > { %v449_v28 = vpop.f32.mrb[2].mxu0  ;;  %v467_v35 = vmax.f32 %v446_v27, 0.0 }
  0xf7   : > { %v450_v29 = vadd.f32 %v449_v28, %v345_v26  ;;  %v451_v30 = vpop.f32.mrb[3].mxu0 }
  0xf8   : > { %v452_v32 = vadd.f32 %v451_v30, %v345_v26 }
  0xf9   : > { %v468_v34 = vmax.f32 %v450_v29, 0.0 }
  0xfa   : > { %v469_v36 = vmax.f32 %v452_v32, 0.0  ;;  %v455_v37 = vpop.f32.mrb[4].mxu0  ;;  %v497_v32 = vpop.permute.xlu0 %496 }
  0xfb   : > { %v457_v38 = vpop.f32.mrb[5].mxu0  ;;  %v894_v39 = vpack.c.bf16 %v468_v34, %v466_v33  ;;  %v456_v41 = vadd.f32 %v455_v37, %v350_v31 }
  0xfc   : > { %v892_v40 = vpack.c.bf16 %v469_v36, %v467_v35  ;;  %v458_v43 = vadd.f32 %v457_v38, %v350_v31  ;;  %v502_v35 = vpop.permute.xlu1 %501 }
  0xfd   : > { %v470_v48 = vmax.f32 %v456_v41, 0.0 }
  0xfe   : > { %v461_v44 = vpop.f32.mrb[6].mxu0  ;;  %893 = vmatprep.subr.bf16.mxu1 %v892_v40  ;;  %v471_v50 = vmax.f32 %v458_v43, 0.0 }
  0xff   : > { %v462_v45 = vadd.f32 %v461_v44, %v355_v42  ;;  %v463_v46 = vpop.f32.mrb[7].mxu0  ;;  %895 = vmatpush1.bf16.msra.mxu1 %v894_v39 }
 0x100   : > { %v464_v47 = vadd.f32 %v463_v46, %v355_v42 }
 0x101   : > { %v472_v49 = vmax.f32 %v462_v45, 0.0 }
 0x102   : > { %v473_v51 = vmax.f32 %v464_v47, 0.0 }
 0x103   : > { %v898_v52 = vpack.c.bf16 %v472_v49, %v470_v48  ;;  %v507_v48 = vpop.permute.xlu0 %506 }
 0x104   : > { %v896_v53 = vpack.c.bf16 %v473_v51, %v471_v50  ;;  %v512_v51 = vpop.permute.xlu1 %511 }
 0x106   : > { %897 = vmatprep.subr.bf16.mxu1 %v896_v53 }
 0x107   : > { %899 = vmatpush1.bf16.msra.mxu1 %v898_v52 }
 0x10a   : > { %875 = vmatmul.mubr.msk.f32.vlgmr.msra.gmra.mrb[0].mxu1 %vm514_vm2, %v316_v54 }
 0x10b   : > { %609 = vmatprep.mubr.f32.mxu1 %v1058_v0 }
 0x10e   : > { %876 = vmatmul.mubr.msk.f32.gmra.mrb[2].mxu1 %vm514_vm2, %v317_v55 }
 0x10f   : > { %615 = vmatprep.mubr.f32.mxu1 %v1058_v0 }
 0x112   : > { %877 = vmatmul.mubr.msk.f32.gmra.mrb[4].mxu1 %vm514_vm2, %v318_v56 }
 0x113   : > { %621 = vmatprep.mubr.f32.mxu1 %v1058_v0 }
 0x116   : > { %878 = vmatmul.mubr.msk.f32.gmra.mrb[6].mxu1 %vm514_vm2, %v319_v57 }
 0x117   : > { %627 = vmatprep.mubr.f32.mxu1 %v1058_v0 }
 0x11a   : > { %879 = vmatmul.mubr.msk.f32.gmra.mrb[8].mxu1 %vm514_vm2, %v320_v58 }
 0x11b   : > { %633 = vmatprep.mubr.f32.mxu1 %v1058_v0 }
 0x11e   : > { %880 = vmatmul.mubr.msk.f32.gmra.mrb[10].mxu1 %vm514_vm2, %v321_v59 }
 0x11f   : > { %639 = vmatprep.mubr.f32.mxu1 %v1058_v0 }
 0x122   : > { %881 = vmatmul.mubr.msk.f32.gmra.mrb[12].mxu1 %vm514_vm2, %v322_v60 }
 0x123   : > { %645 = vmatprep.mubr.f32.mxu1 %v1058_v0 }
 0x126   : > { %882 = vmatmul.mubr.msk.f32.gmra.mrb[14].mxu1 %vm514_vm2, %v323_v61 }
 0x1dd   : > { %v605_v62 = vpop.f32.mrb[0].mxu1 }
 0x1de   : > { %v607_v63 = vpop.f32.mrb[1].mxu1  ;;  %v606_v2 = vadd.f32 %v605_v62, %v477_v1 }
 0x1df   : > { %v608_v4 = vadd.f32 %v607_v63, %v477_v1  ;;  %v332_v63 = vld [vmem:[%s1333_s5] sm:$0xff]  ;;  %v333_v1 = vld [vmem:[%s1333_s5 + $0x8] sm:$0xff] }
 0x1e0   : > { %v652_v9 = vmax.f32 %v606_v2, 0.0  ;;  %v671_v2 = vpop.permute.xlu0 %670 }
 0x1e1   : > { %v611_v5 = vpop.f32.mrb[2].mxu1  ;;  %v653_v11 = vmax.f32 %v608_v4, 0.0 }
 0x1e2   : > { %v612_v6 = vadd.f32 %v611_v5, %v482_v3  ;;  %v613_v7 = vpop.f32.mrb[3].mxu1 }
 0x1e3   : > { %v614_v8 = vadd.f32 %v613_v7, %v482_v3  ;;  %v676_v7 = vpop.permute.xlu1 %675 }
 0x1e4   : > { %v654_v10 = vmax.f32 %v612_v6, 0.0 }
 0x1e5   : > { %v655_v12 = vmax.f32 %v614_v8, 0.0  ;;  %v617_v13 = vpop.f32.mrb[4].mxu1 }
 0x1e6   : > { %v902_v14 = vpack.c.bf16 %v654_v10, %v652_v9  ;;  %v619_v15 = vpop.f32.mrb[5].mxu1  ;;  %v618_v18 = vadd.f32 %v617_v13, %v487_v16 }
 0x1e7   : > { %v900_v17 = vpack.c.bf16 %v655_v12, %v653_v11  ;;  %v620_v20 = vadd.f32 %v619_v15, %v487_v16 }
 0x1e8   : > { %v656_v25 = vmax.f32 %v618_v18, 0.0 }
 0x1e9   : > { %v623_v21 = vpop.f32.mrb[6].mxu1  ;;  %901 = vmatprep.subr.bf16.mxu0 %v900_v17  ;;  %v657_v27 = vmax.f32 %v620_v20, 0.0 }
 0x1ea   : > { %v624_v22 = vadd.f32 %v623_v21, %v492_v19  ;;  %v625_v23 = vpop.f32.mrb[7].mxu1  ;;  %903 = vmatpush1.bf16.msra.mxu0 %v902_v14 }
 0x1eb   : > { %v626_v24 = vadd.f32 %v625_v23, %v492_v19 }
 0x1ec   : > { %v658_v26 = vmax.f32 %v624_v22, 0.0 }
 0x1ed   : > { %v659_v28 = vmax.f32 %v626_v24, 0.0  ;;  %v629_v29 = vpop.f32.mrb[8].mxu1 }
 0x1ee   : > { %v906_v30 = vpack.c.bf16 %v658_v26, %v656_v25  ;;  %v631_v31 = vpop.f32.mrb[9].mxu1  ;;  %v630_v34 = vadd.f32 %v629_v29, %v497_v32 }
 0x1ef   : > { %v904_v33 = vpack.c.bf16 %v659_v28, %v657_v27  ;;  %v632_v36 = vadd.f32 %v631_v31, %v497_v32 }
 0x1f0   : > { %v660_v41 = vmax.f32 %v630_v34, 0.0 }
 0x1f1   : > { %v635_v37 = vpop.f32.mrb[10].mxu1  ;;  %905 = vmatprep.subr.bf16.mxu0 %v904_v33  ;;  %v661_v43 = vmax.f32 %v632_v36, 0.0 }
 0x1f2   : > { %v636_v38 = vadd.f32 %v635_v37, %v502_v35  ;;  %v637_v39 = vpop.f32.mrb[11].mxu1  ;;  %907 = vmatpush1.bf16.msra.mxu0 %v906_v30 }
 0x1f3   : > { %v638_v40 = vadd.f32 %v637_v39, %v502_v35 }
 0x1f4   : > { %v662_v42 = vmax.f32 %v636_v38, 0.0 }
 0x1f5   : > { %v663_v44 = vmax.f32 %v638_v40, 0.0  ;;  %v641_v45 = vpop.f32.mrb[12].mxu1 }
 0x1f6   : > { %v910_v46 = vpack.c.bf16 %v662_v42, %v660_v41  ;;  %v643_v47 = vpop.f32.mrb[13].mxu1  ;;  %v642_v50 = vadd.f32 %v641_v45, %v507_v48 }
 0x1f7   : > { %v908_v49 = vpack.c.bf16 %v663_v44, %v661_v43  ;;  %v644_v52 = vadd.f32 %v643_v47, %v507_v48 }
 0x1f8   : > { %v664_v57 = vmax.f32 %v642_v50, 0.0 }
 0x1f9   : > { %v647_v53 = vpop.f32.mrb[14].mxu1  ;;  %909 = vmatprep.subr.bf16.mxu0 %v908_v49  ;;  %v665_v59 = vmax.f32 %v644_v52, 0.0 }
 0x1fa   : > { %v648_v54 = vadd.f32 %v647_v53, %v512_v51  ;;  %v649_v55 = vpop.f32.mrb[15].mxu1  ;;  %911 = vmatpush1.bf16.msra.mxu0 %v910_v46 }
 0x1fb   : > { %v650_v56 = vadd.f32 %v649_v55, %v512_v51 }
 0x1fc   : > { %v666_v58 = vmax.f32 %v648_v54, 0.0 }
 0x1fd   : > { %v667_v60 = vmax.f32 %v650_v56, 0.0 }
 0x1fe   : > { %v914_v61 = vpack.c.bf16 %v666_v58, %v664_v57 }
 0x1ff   : > { %v912_v62 = vpack.c.bf16 %v667_v60, %v665_v59 }
 0x201   : > { %913 = vmatprep.subr.bf16.mxu0 %v912_v62 }
 0x202   : > { %915 = vmatpush1.bf16.msra.mxu0 %v914_v61 }
 0x205   : > { %883 = vmatmul.mubr.msk.f32.vlgmr.msra.gmra.mrb[8].mxu0 %vm678_vm3, %v332_v63 }
 0x206   : > { %755 = vmatprep.mubr.f32.mxu0 %v1058_v0 }
 0x209   : > { %884 = vmatmul.mubr.msk.f32.gmra.mrb[10].mxu0 %vm678_vm3, %v333_v1 }
 0x2d8   : > { %v751_v3 = vpop.f32.mrb[8].mxu0 }
 0x2d9   : > { %v752_v4 = vadd.f32 %v751_v3, %v671_v2  ;;  %v753_v5 = vpop.f32.mrb[9].mxu0 }
 0x2da   : > { %v754_v6 = vadd.f32 %v753_v5, %v671_v2 }
 0x2db   : > { %762 = vst [vmem:[%s296_s10] sm:$0xff] %v752_v4 }
 0x2dc   : > { %763 = vst [vmem:[%s296_s10 + $0x8] sm:$0xff] %v754_v6  ;;  %v757_v0 = vpop.f32.mrb[10].mxu0 }
 0x2dd   : > { %v758_v8 = vadd.f32 %v757_v0, %v676_v7  ;;  %v759_v9 = vpop.f32.mrb[11].mxu0 }
 0x2de   : > { %v760_v10 = vadd.f32 %v759_v9, %v676_v7 }
 0x2df   : > { %764 = vst [vmem:[%s296_s10 + $0x10] sm:$0xff] %v758_v8 }
 0x2e0   : > { %765 = vst [vmem:[%s296_s10 + $0x18] sm:$0xff] %v760_v10 }
 0x2e1   : > { %991 = shalt.err (!%p988_p5)
}
 0x2e2   : > { %s992_s23 = scalar_lea.hbm %s1280_s18, 512  ;;  %s996_s10 = scalar_lea.hbm %s1335_s7, 1024 }
 0x2e3   : > { %p993_p6 = scmp.ne.s32.totalorder %s1280_s18, %s992_s23  ;;  %p997_p10 = scmp.lt.u32.totalorder %s1280_s18, %s1335_s7 }
 0x2e4   : > { %p998_p11 = scmp.lt.u32.totalorder %s996_s10, %s992_s23  ;;  %p1000_p13 = scmp.lt.u32.totalorder %s992_s23, %s1280_s18 }
 0x2e5   : > { %p994_p7 = pnand %p993_p6, %p1143_p4 }
 0x2e6   : > { %p999_p12 = por %p998_p11, %p997_p10 }
 0x2e7   : > { %p995_p9 = pneg %p994_p7 }
 0x2e8   : > { %p1001_p0 = por %p1000_p13, %p999_p12 }
 0x2ea   : > { %p1002_p1 = pnand %p1001_p0, %p995_p9 }
 0x2ec   : > { %1005 = shalt.err (!%p1002_p1)
}
 0x2ed   : > { %s1061_s17 = smov 256   ;;  %s1062_s19 = smov 16  }
 0x2ee   : > { %916 = dma.vmem_to_hbm [thread:$0]  (%p1143_p4), %s1275_s12, 512, %s1280_s18, %s1282_s27, %s1061_s17, %s1061_s17, %s1062_s19  }
 0x2ef PF: > { %p922_p2 = scmp.ge.s32.totalorder %s1056_s29, 2  ;;  %s797_s21 = sand.u32 1, %s1036_s24  }
 0x2f0   : > { %s798_s20 = scalar_lea.sflag [#allocation3], %s797_s21 }
 0x2f1   : > { %p919_p3 = pnand %p922_p2, %p1150_p8 }
 0x2f3   : > { %1031 = dma.done.wait (!%p919_p3), %s798_s20, 512  }
 0x2f4   : > { %1033 = vsyncadd (!%p919_p3), %s798_s20, 4294966784  ;;  %s20_s29 = sadd.s32 1, %s1056_s29   ;;  %s1338_s24 = smov %s1040_s25 }
 0x2f5   : > { %p17_p5 = scmp.ge.s32.totalorder %s20_s29, 4   ;;  %s1339_s25 = smov %s1044_s26 }
 0x2f6   : > { %s1340_s26 = smov %s1156_s14  ;;  %s1341_s27 = smov %s1052_s28 }
 0x2f7   : > { %s1342_s28 = smov %s1344_s9  ;;  %19 = sbr.rel (!%p17_p5) target bundleno = 4 (0x4), region = 83 }
 0x2fe   :  { %803 = vsyncpa [#allocation3], 1 }
 0x2ff   :  { %805 = vsyncpa [#allocation3 + $0x1], 1 }

</bundles_post_ra>
